<compile_context>
chip_gen: v5e
topology: v5e:2x2
jax: 0.10.0
libtpu: 0.0.40
codegen_flags: <defaults>
</compile_context>

<pallas_src>
import functools

import jax
import jax.numpy as jnp
from jax.experimental import pallas as pl
from jax.experimental.pallas import tpu as pltpu


# ----------------------------- Pallas kernel --------------------------------

def fused_encoder_seq_kernel(x_ref, h0_ref, gk_ref, wrux_ref, wruh_ref, bru_ref,
                             wxc_ref, whc_ref, bc_ref,
                             out_ref, h_ref, *, num_layers, nh):
    """Fused multi-layer, multi-timestep GCN-GRU, whole batch per invocation.

    Grid axis 0 = time (sequential).  Weight refs use constant index_maps so they
    are fetched once and stay VMEM-resident; h_ref (constant index_map output)
    doubles as the cross-timestep hidden-state carry.

    Layouts (lane-dense, node-major, NH = num_nodes * rnn_units):
      x_ref:   (1, B, NH)   this timestep's padded layer-0 input
      h0_ref:  (L, B, NH)   initial hidden state
      gk_ref:  (NH, NH)     kron(adj^T, I_H)                      [weight dtype]
      wrux_ref:(L, NH, 2NH) gk @ kron(I_N, [Wxr | Wxu])           [weight dtype]
      wruh_ref:(L, NH, 2NH) gk @ kron(I_N, [Whr | Whu])           [weight dtype]
      bru_ref: (L, 1, 2NH)  fused gate bias                       [f32]
      wxc_ref: (L, NH, NH)  gk @ kron(I_N, Wxc)                   [weight dtype]
      whc_ref: (L, NH, NH)  kron(I_N, Whc)                        [weight dtype]
      bc_ref:  (L, 1, NH)                                         [f32]
      out_ref: (1, B, NH)   last layer's new hidden state at this timestep
      h_ref:   (L, B, NH)   hidden-state carry / final hidden state (output)
    """
    t = pl.program_id(0)

    @pl.when(t == 0)
    def _():
        h_ref[...] = h0_ref[...]

    wdt = gk_ref.dtype          # MXU operand dtype (bf16 in the fast path)
    gk = gk_ref[...]
    x = x_ref[0]                                          # (B, NH) f32
    for layer in range(num_layers):                       # static unroll; L small
        h = h_ref[layer]                                  # (B, NH) f32
        xb = x.astype(wdt)
        hb = h.astype(wdt)

        # graph convolution of h only (x's graph conv is folded into the weights)
        hg = jnp.dot(hb, gk, preferred_element_type=jnp.float32)           # (B, NH)

        # fused reset/update gates, row-split dots (no (B, 2NH) concat copy);
        # output columns grouped [r | u] -> 128-lane aligned slices
        gates = jax.nn.sigmoid(
            jnp.dot(xb, wrux_ref[layer], preferred_element_type=jnp.float32)
            + jnp.dot(hb, wruh_ref[layer], preferred_element_type=jnp.float32)
            + bru_ref[layer])
        r = gates[:, :nh]
        u = gates[:, nh:]

        # candidate state
        c = jnp.tanh(
            jnp.dot(xb, wxc_ref[layer], preferred_element_type=jnp.float32)
            + jnp.dot((r * hg).astype(wdt), whc_ref[layer],
                      preferred_element_type=jnp.float32)
            + bc_ref[layer])

        h_new = u * h + (1.0 - u) * c                      # f32 elementwise
        h_ref[layer] = h_new                               # VMEM-resident carry
        x = h_new                                          # feeds next layer

    out_ref[0] = x


def _encoder_seq_pallas_impl(x_seq, h0, gk, wrux, wruh, bru, wxc, whc, bc):
    """x_seq: (T, B, NH), h0: (L, B, NH) -> (outputs (T,B,NH), hidden (L,B,NH))."""
    T, B, NH = x_seq.shape
    L = h0.shape[0]
    kern = functools.partial(fused_encoder_seq_kernel, num_layers=L, nh=NH)
    const3 = lambda t: (0, 0, 0)
    const2 = lambda t: (0, 0)
    return pl.pallas_call(
        kern,
        out_shape=(jax.ShapeDtypeStruct((T, B, NH), jnp.float32),
                   jax.ShapeDtypeStruct((L, B, NH), jnp.float32)),
        grid_spec=pltpu.PrefetchScalarGridSpec(
            num_scalar_prefetch=0,
            grid=(T,),
            in_specs=[
                pl.BlockSpec((1, B, NH), lambda t: (t, 0, 0)),   # x at step t
                pl.BlockSpec((L, B, NH), const3),                # h0 (fetched once)
                pl.BlockSpec((NH, NH), const2),                  # gk     (resident)
                pl.BlockSpec((L, NH, 2 * NH), const3),           # wrux   (resident)
                pl.BlockSpec((L, NH, 2 * NH), const3),           # wruh   (resident)
                pl.BlockSpec((L, 1, 2 * NH), const3),            # bru    (resident)
                pl.BlockSpec((L, NH, NH), const3),               # wxc    (resident)
                pl.BlockSpec((L, NH, NH), const3),               # whc    (resident)
                pl.BlockSpec((L, 1, NH), const3),                # bc     (resident)
            ],
            out_specs=(pl.BlockSpec((1, B, NH), lambda t: (t, 0, 0)),
                       pl.BlockSpec((L, B, NH), const3)),
        ),
        compiler_params=pltpu.CompilerParams(
            dimension_semantics=("arbitrary",)),        # time recurrence: sequential
    )(x_seq, h0, gk, wrux, wruh, bru, wxc, whc, bc)


_encoder_seq_pallas = jax.jit(_encoder_seq_pallas_impl)


# ------------------------- Parameters & preparation ---------------------------

def make_params(key, num_rnn_layers, num_nodes, rnn_units, input_dim):
    """Deterministic synthetic per-layer GRU parameters (original FC layout)."""
    params = []
    for layer in range(num_rnn_layers):
        din = input_dim if layer == 0 else rnn_units
        key, k0, k1, k2, k3, k4, k5 = jax.random.split(key, 7)
        s = 0.1
        params.append(dict(
            din=din,
            wxg=s * jax.random.normal(k0, (din, 2 * rnn_units), jnp.float32),
            whg=s * jax.random.normal(k1, (rnn_units, 2 * rnn_units), jnp.float32),
            bg=s * jax.random.normal(k2, (2 * rnn_units,), jnp.float32),
            wxc=s * jax.random.normal(k3, (din, rnn_units), jnp.float32),
            whc=s * jax.random.normal(k4, (rnn_units, rnn_units), jnp.float32),
            bc=s * jax.random.normal(k5, (rnn_units,), jnp.float32),
        ))
    return params


def prepare_encoder_params(layer_params, adj, num_nodes, rnn_units, input_dim,
                           weight_dtype=jnp.bfloat16):
    """One-time parameter preparation (call ONCE, reuse every step).

    Node-shared FC weights become kron(I_N, W); the graph kernel kron(adj^T, I_H)
    is folded into the x-side gate weights and the candidate x-weight, so the
    kernel only needs one in-kernel graph conv (hg = h @ gk) per layer.
    Layer-0 features are zero-padded up to rnn_units (zero weight rows).
    """
    assert input_dim <= rnn_units, "layer-0 features are padded up to rnn_units"
    N, H = num_nodes, rnn_units
    F = H                                   # padded per-node feature width
    eye_n = jnp.eye(N, dtype=jnp.float32)
    eye_f = jnp.eye(F, dtype=jnp.float32)
    gk = jnp.kron(adj.T.astype(jnp.float32), eye_f)          # (NH, NH)

    wrux, wruh, bru, wxc_e, whc_e, bc_e = [], [], [], [], [], []
    for p in layer_params:
        din = p["din"]
        wxg = jnp.zeros((F, 2 * H), jnp.float32).at[:din].set(p["wxg"])
        wxc = jnp.zeros((F, H), jnp.float32).at[:din].set(p["wxc"])
        wxr, wxu = wxg[:, :H], wxg[:, H:]
        whr, whu = p["whg"][:, :H], p["whg"][:, H:]
        br, bu = p["bg"][:H], p["bg"][H:]

        # column grouping [r | u]; graph kernel folded into the x/h -> gate maps
        wrux.append(gk @ jnp.concatenate(
            [jnp.kron(eye_n, wxr), jnp.kron(eye_n, wxu)], axis=1))    # (NH, 2NH)
        wruh.append(gk @ jnp.concatenate(
            [jnp.kron(eye_n, whr), jnp.kron(eye_n, whu)], axis=1))    # (NH, 2NH)
        bru.append(jnp.concatenate([jnp.tile(br, N), jnp.tile(bu, N)])[None, :])
        wxc_e.append(gk @ jnp.kron(eye_n, wxc))              # (NH, NH), gk folded
        whc_e.append(jnp.kron(eye_n, p["whc"]))              # (NH, NH)
        bc_e.append(jnp.tile(p["bc"], N)[None, :])           # (1, NH)

    wdt = weight_dtype
    return dict(
        gk=gk.astype(wdt),
        wrux=jnp.stack(wrux).astype(wdt), wruh=jnp.stack(wruh).astype(wdt),
        bru=jnp.stack(bru).astype(jnp.float32),
        wxc=jnp.stack(wxc_e).astype(wdt), whc=jnp.stack(whc_e).astype(wdt),
        bc=jnp.stack(bc_e).astype(jnp.float32),
        num_nodes=N, rnn_units=H, input_dim=input_dim,
        num_layers=len(layer_params),
    )


# ------------------------------ Encoder glue ---------------------------------

def _to_lane_dense(x, num_nodes, rnn_units, input_dim):
    """(..., N*input_dim) -> (..., N*rnn_units) node-major, zero-padded features."""
    lead = x.shape[:-1]
    x = x.reshape(*lead, num_nodes, input_dim)
    pad = [(0, 0)] * (x.ndim - 1) + [(0, rnn_units - input_dim)]
    x = jnp.pad(x, pad)
    return x.reshape(*lead, num_nodes * rnn_units)


def encoder_forward_seq(inputs_seq, prepared, hidden_state=None):
    """Whole-sequence encoder in one pallas_call.

    inputs_seq: (T, B, num_nodes * input_dim)
    returns (outputs (T, B, hidden_state_size), final hidden (L, B, hidden_state_size))
    """
    N, H = prepared["num_nodes"], prepared["rnn_units"]
    din, L = prepared["input_dim"], prepared["num_layers"]
    T, B = inputs_seq.shape[0], inputs_seq.shape[1]
    NH = N * H
    if hidden_state is None:
        hidden_state = jnp.zeros((L, B, NH), jnp.float32)
    x_seq = _to_lane_dense(inputs_seq.astype(jnp.float32), N, H, din)
    outs, hidden = _encoder_seq_pallas(
        x_seq, hidden_state, prepared["gk"], prepared["wrux"], prepared["wruh"],
        prepared["bru"], prepared["wxc"], prepared["whc"], prepared["bc"])
    return outs, hidden


def encoder_forward(inputs, prepared, hidden_state=None):
    """Mirrors EncoderModel.forward (single timestep).

    inputs: (B, num_nodes * input_dim)
    returns (output (B, hidden_state_size), hidden (L, B, hidden_state_size))
    """
    outs, hidden = encoder_forward_seq(inputs[None], prepared, hidden_state)
    return outs[0], hidden


# ------------------------------ Pure-JAX refs ----------------------------------

def ref_encoder_forward(inputs, adj, layer_params, num_nodes, rnn_units, input_dim,
                        hidden_state=None):
    B = inputs.shape[0]
    L = len(layer_params)
    N, H = num_nodes, rnn_units
    if hidden_state is None:
        hidden_state = jnp.zeros((L, B, N * H), jnp.float32)
    output = inputs
    din = input_dim
    hs = []
    for layer, p in enumerate(layer_params):
        x = output.reshape(B, N, din)
        h = hidden_state[layer].reshape(B, N, H)
        xg = jnp.einsum("nm,bmd->bnd", adj, x)
        hg = jnp.einsum("nm,bmh->bnh", adj, h)
        gates = jax.nn.sigmoid(xg @ p["wxg"] + hg @ p["whg"] + p["bg"])
        r, u = gates[..., :H], gates[..., H:]
        c = jnp.tanh(xg @ p["wxc"] + (r * hg) @ p["whc"] + p["bc"])
        h_new = u * h + (1.0 - u) * c
        hs.append(h_new.reshape(B, N * H))
        output = hs[-1]
        din = H
    return output, jnp.stack(hs, axis=0)


def ref_encoder_seq(inputs_seq, adj, layer_params, num_nodes, rnn_units, input_dim,
                    hidden_state=None):
    outs = []
    for t in range(inputs_seq.shape[0]):
        out, hidden_state = ref_encoder_forward(
            inputs_seq[t], adj, layer_params, num_nodes, rnn_units, input_dim,
            hidden_state)
        outs.append(out)
    return jnp.stack(outs, axis=0), hidden_state


# --------------------------------- main ---------------------------------------

if __name__ == "__main__":
    batch_size = 2
    num_nodes = 8
    rnn_units = 16          # num_nodes * rnn_units = 128 -> exactly lane-dense
    input_dim = 1
    num_rnn_layers = 2
    seq_len = 8

    key = jax.random.PRNGKey(0)
    k_adj, k_in, k_par = jax.random.split(key, 3)

    # deterministic row-normalized dense adjacency ("graph kernel")
    adj = jax.nn.softmax(
        jax.random.normal(k_adj, (num_nodes, num_nodes), jnp.float32), axis=-1)
    inputs_seq = jax.random.normal(
        k_in, (seq_len, batch_size, num_nodes * input_dim), jnp.float32)
    params = make_params(k_par, num_rnn_layers, num_nodes, rnn_units, input_dim)

    # One-time parameter preparation (hoisted out of the step function).
    prepared_f32 = prepare_encoder_params(
        params, adj, num_nodes, rnn_units, input_dim, weight_dtype=jnp.float32)
    prepared_bf16 = prepare_encoder_params(
        params, adj, num_nodes, rnn_units, input_dim, weight_dtype=jnp.bfloat16)

    HSS = num_nodes * rnn_units

    # --- single-step forward (exact EncoderModel.forward semantics), f32 weights ---
    out1, hid1 = encoder_forward(inputs_seq[0], prepared_f32)
    out1 = jax.block_until_ready(out1)
    assert out1.shape == (batch_size, HSS)
    assert hid1.shape == (num_rnn_layers, batch_size, HSS)
    ref_out1, ref_hid1 = ref_encoder_forward(
        inputs_seq[0], adj, params, num_nodes, rnn_units, input_dim)
    assert jnp.allclose(out1, ref_out1, atol=1e-5), "single-step output mismatch"
    assert jnp.allclose(hid1, ref_hid1, atol=1e-5), "single-step hidden mismatch"

    # --- whole-sequence fused kernel, f32 weights (strict check) ---
    outs_f32, hid_f32 = encoder_forward_seq(inputs_seq, prepared_f32)
    outs_f32 = jax.block_until_ready(outs_f32)
    ref_outs, ref_hid = ref_encoder_seq(
        inputs_seq, adj, params, num_nodes, rnn_units, input_dim)
    assert outs_f32.shape == (seq_len, batch_size, HSS)
    assert hid_f32.shape == (num_rnn_layers, batch_size, HSS)
    assert jnp.allclose(outs_f32, ref_outs, atol=1e-5), "seq output mismatch (f32)"
    assert jnp.allclose(hid_f32, ref_hid, atol=1e-5), "seq hidden mismatch (f32)"

    # --- whole-sequence fused kernel, bf16 weights (fast path, loose check) ---
    outs_bf, hid_bf = encoder_forward_seq(inputs_seq, prepared_bf16)
    outs_bf = jax.block_until_ready(outs_bf)
    hid_bf = jax.block_until_ready(hid_bf)
    assert jnp.allclose(outs_bf, ref_outs, atol=5e-2), "seq output mismatch (bf16)"
    assert jnp.allclose(hid_bf, ref_hid, atol=5e-2), "seq hidden mismatch (bf16)"

    print("KERNEL_OK")
</pallas_src>

<mosaic_0001>
module attributes {stable_mosaic.version = 11 : i64} {
  func.func @fused_encoder_seq_kernel(%arg0: i32, %arg1: memref<1x2x128xf32, #tpu.memory_space<vmem>>, %arg2: memref<2x2x128xf32, #tpu.memory_space<vmem>>, %arg3: memref<128x128xf32, #tpu.memory_space<vmem>>, %arg4: memref<2x128x256xf32, #tpu.memory_space<vmem>>, %arg5: memref<2x128x256xf32, #tpu.memory_space<vmem>>, %arg6: memref<2x1x256xf32, #tpu.memory_space<vmem>>, %arg7: memref<2x128x128xf32, #tpu.memory_space<vmem>>, %arg8: memref<2x128x128xf32, #tpu.memory_space<vmem>>, %arg9: memref<2x1x128xf32, #tpu.memory_space<vmem>>, %arg10: memref<1x2x128xf32, #tpu.memory_space<vmem>>, %arg11: memref<2x2x128xf32, #tpu.memory_space<vmem>>) attributes {dimension_semantics = [#tpu.dimension_semantics<arbitrary>], iteration_bounds = array<i64: 1>, scalar_prefetch = 0 : i64, scratch_operands = 0 : i64, tpu.core_type = #tpu.core_type<tc>, window_params = [{transform_indices = @transform_0, window_bounds = array<i64: 1, 2, 128>}, {pipeline_mode = #tpu.pipeline_mode<synchronous>, transform_indices = @transform_1, window_bounds = array<i64: 2, 2, 128>}, {pipeline_mode = #tpu.pipeline_mode<synchronous>, transform_indices = @transform_2, window_bounds = array<i64: 128, 128>}, {pipeline_mode = #tpu.pipeline_mode<synchronous>, transform_indices = @transform_3, window_bounds = array<i64: 2, 128, 256>}, {pipeline_mode = #tpu.pipeline_mode<synchronous>, transform_indices = @transform_4, window_bounds = array<i64: 2, 128, 256>}, {pipeline_mode = #tpu.pipeline_mode<synchronous>, transform_indices = @transform_5, window_bounds = array<i64: 2, 1, 256>}, {pipeline_mode = #tpu.pipeline_mode<synchronous>, transform_indices = @transform_6, window_bounds = array<i64: 2, 128, 128>}, {pipeline_mode = #tpu.pipeline_mode<synchronous>, transform_indices = @transform_7, window_bounds = array<i64: 2, 128, 128>}, {pipeline_mode = #tpu.pipeline_mode<synchronous>, transform_indices = @transform_8, window_bounds = array<i64: 2, 1, 128>}, {transform_indices = @transform_9, window_bounds = array<i64: 1, 2, 128>}, {pipeline_mode = #tpu.pipeline_mode<synchronous>, transform_indices = @transform_10, window_bounds = array<i64: 2, 2, 128>}]} {
    %c0_i32 = arith.constant 0 : i32
    %0 = arith.cmpi eq, %arg0, %c0_i32 : i32
    %1 = arith.extui %0 : i1 to i32
    %c0_i32_0 = arith.constant 0 : i32
    %2 = arith.cmpi ne, %1, %c0_i32_0 : i32
    scf.if %2 {
      %c0_68 = arith.constant 0 : index
      %c0_69 = arith.constant 0 : index
      %c0_70 = arith.constant 0 : index
      %93 = vector.load %arg2[%c0_68, %c0_69, %c0_70] : memref<2x2x128xf32, #tpu.memory_space<vmem>>, vector<2x2x128xf32>
      %c0_71 = arith.constant 0 : index
      %c0_72 = arith.constant 0 : index
      %c0_73 = arith.constant 0 : index
      %94 = vector.load %arg11[%c0_71, %c0_72, %c0_73] : memref<2x2x128xf32, #tpu.memory_space<vmem>>, vector<2x2x128xf32>
      tpu.vector_store %arg11[%c0_71, %c0_72, %c0_73], %93 {strides = array<i32>} : memref<2x2x128xf32, #tpu.memory_space<vmem>>, vector<2x2x128xf32>,
    } else {
    }
    %c0 = arith.constant 0 : index
    %c0_1 = arith.constant 0 : index
    %3 = vector.load %arg3[%c0, %c0_1] : memref<128x128xf32, #tpu.memory_space<vmem>>, vector<128x128xf32>
    %c0_2 = arith.constant 0 : index
    %c0_3 = arith.constant 0 : index
    %c0_4 = arith.constant 0 : index
    %4 = vector.load %arg1[%c0_2, %c0_3, %c0_4] : memref<1x2x128xf32, #tpu.memory_space<vmem>>, vector<1x2x128xf32>
    %5 = vector.shape_cast %4 : vector<1x2x128xf32> to vector<2x128xf32>
    %c0_5 = arith.constant 0 : index
    %c0_6 = arith.constant 0 : index
    %c0_7 = arith.constant 0 : index
    %6 = vector.load %arg11[%c0_5, %c0_6, %c0_7] : memref<2x2x128xf32, #tpu.memory_space<vmem>>, vector<1x2x128xf32>
    %7 = vector.shape_cast %6 : vector<1x2x128xf32> to vector<2x128xf32>
    %cst = arith.constant dense<0.000000e+00> : vector<2x128xf32>
    %8 = tpu.matmul %7, %3, %cst {dimension_numbers = #tpu.dot_dimension_numbers<[1], [0], [0], [1], [0, 0, 1, 1], [], []>} : vector<2x128xf32>, vector<128x128xf32>, vector<2x128xf32> -> vector<2x128xf32>
    %c0_8 = arith.constant 0 : index
    %c0_9 = arith.constant 0 : index
    %c0_10 = arith.constant 0 : index
    %9 = vector.load %arg4[%c0_8, %c0_9, %c0_10] : memref<2x128x256xf32, #tpu.memory_space<vmem>>, vector<1x128x256xf32>
    %10 = vector.shape_cast %9 : vector<1x128x256xf32> to vector<128x256xf32>
    %cst_11 = arith.constant dense<0.000000e+00> : vector<2x256xf32>
    %11 = tpu.matmul %5, %10, %cst_11 {dimension_numbers = #tpu.dot_dimension_numbers<[1], [0], [0], [1], [0, 0, 1, 1], [], []>} : vector<2x128xf32>, vector<128x256xf32>, vector<2x256xf32> -> vector<2x256xf32>
    %c0_12 = arith.constant 0 : index
    %c0_13 = arith.constant 0 : index
    %c0_14 = arith.constant 0 : index
    %12 = vector.load %arg5[%c0_12, %c0_13, %c0_14] : memref<2x128x256xf32, #tpu.memory_space<vmem>>, vector<1x128x256xf32>
    %13 = vector.shape_cast %12 : vector<1x128x256xf32> to vector<128x256xf32>
    %cst_15 = arith.constant dense<0.000000e+00> : vector<2x256xf32>
    %14 = tpu.matmul %7, %13, %cst_15 {dimension_numbers = #tpu.dot_dimension_numbers<[1], [0], [0], [1], [0, 0, 1, 1], [], []>} : vector<2x128xf32>, vector<128x256xf32>, vector<2x256xf32> -> vector<2x256xf32>
    %15 = arith.addf %11, %14 : vector<2x256xf32>
    %c0_16 = arith.constant 0 : index
    %c0_17 = arith.constant 0 : index
    %c0_18 = arith.constant 0 : index
    %16 = vector.load %arg6[%c0_16, %c0_17, %c0_18] : memref<2x1x256xf32, #tpu.memory_space<vmem>>, vector<1x1x256xf32>
    %17 = vector.shape_cast %16 : vector<1x1x256xf32> to vector<1x256xf32>
    %18 = vector.broadcast %17 : vector<1x256xf32> to vector<2x256xf32>
    %19 = arith.addf %15, %18 : vector<2x256xf32>
    %20 = arith.negf %19 : vector<2x256xf32>
    %21 = math.exp %20 : vector<2x256xf32>
    %cst_19 = arith.constant 1.000000e+00 : f32
    %22 = vector.broadcast %cst_19 : f32 to vector<2x256xf32>
    %23 = arith.addf %22, %21 : vector<2x256xf32>
    %24 = arith.divf %22, %23 : vector<2x256xf32>
    %25 = vector.extract_strided_slice %24 {offsets = [0, 0], sizes = [2, 128], strides = [1, 1]} : vector<2x256xf32> to vector<2x128xf32>
    %26 = vector.extract_strided_slice %24 {offsets = [0, 128], sizes = [2, 128], strides = [1, 1]} : vector<2x256xf32> to vector<2x128xf32>
    %c0_20 = arith.constant 0 : index
    %c0_21 = arith.constant 0 : index
    %c0_22 = arith.constant 0 : index
    %27 = vector.load %arg7[%c0_20, %c0_21, %c0_22] : memref<2x128x128xf32, #tpu.memory_space<vmem>>, vector<1x128x128xf32>
    %28 = vector.shape_cast %27 : vector<1x128x128xf32> to vector<128x128xf32>
    %cst_23 = arith.constant dense<0.000000e+00> : vector<2x128xf32>
    %29 = tpu.matmul %5, %28, %cst_23 {dimension_numbers = #tpu.dot_dimension_numbers<[1], [0], [0], [1], [0, 0, 1, 1], [], []>} : vector<2x128xf32>, vector<128x128xf32>, vector<2x128xf32> -> vector<2x128xf32>
    %30 = arith.mulf %25, %8 : vector<2x128xf32>
    %c0_24 = arith.constant 0 : index
    %c0_25 = arith.constant 0 : index
    %c0_26 = arith.constant 0 : index
    %31 = vector.load %arg8[%c0_24, %c0_25, %c0_26] : memref<2x128x128xf32, #tpu.memory_space<vmem>>, vector<1x128x128xf32>
    %32 = vector.shape_cast %31 : vector<1x128x128xf32> to vector<128x128xf32>
    %cst_27 = arith.constant dense<0.000000e+00> : vector<2x128xf32>
    %33 = tpu.matmul %30, %32, %cst_27 {dimension_numbers = #tpu.dot_dimension_numbers<[1], [0], [0], [1], [0, 0, 1, 1], [], []>} : vector<2x128xf32>, vector<128x128xf32>, vector<2x128xf32> -> vector<2x128xf32>
    %34 = arith.addf %29, %33 : vector<2x128xf32>
    %c0_28 = arith.constant 0 : index
    %c0_29 = arith.constant 0 : index
    %c0_30 = arith.constant 0 : index
    %35 = vector.load %arg9[%c0_28, %c0_29, %c0_30] : memref<2x1x128xf32, #tpu.memory_space<vmem>>, vector<1x1x128xf32>
    %36 = vector.shape_cast %35 : vector<1x1x128xf32> to vector<1x128xf32>
    %37 = vector.broadcast %36 : vector<1x128xf32> to vector<2x128xf32>
    %38 = arith.addf %34, %37 : vector<2x128xf32>
    %39 = math.tanh %38 : vector<2x128xf32>
    %40 = arith.mulf %26, %7 : vector<2x128xf32>
    %cst_31 = arith.constant 1.000000e+00 : f32
    %41 = vector.broadcast %cst_31 : f32 to vector<2x128xf32>
    %42 = arith.subf %41, %26 : vector<2x128xf32>
    %43 = arith.mulf %42, %39 : vector<2x128xf32>
    %44 = arith.addf %40, %43 : vector<2x128xf32>
    %c0_32 = arith.constant 0 : index
    %c0_33 = arith.constant 0 : index
    %c0_34 = arith.constant 0 : index
    %45 = vector.load %arg11[%c0_32, %c0_33, %c0_34] : memref<2x2x128xf32, #tpu.memory_space<vmem>>, vector<1x2x128xf32>
    %46 = vector.shape_cast %45 : vector<1x2x128xf32> to vector<2x128xf32>
    %47 = vector.shape_cast %44 : vector<2x128xf32> to vector<1x2x128xf32>
    tpu.vector_store %arg11[%c0_32, %c0_33, %c0_34], %47 {strides = array<i32>} : memref<2x2x128xf32, #tpu.memory_space<vmem>>, vector<1x2x128xf32>,
    %c1 = arith.constant 1 : index
    %c0_35 = arith.constant 0 : index
    %c0_36 = arith.constant 0 : index
    %48 = vector.load %arg11[%c1, %c0_35, %c0_36] : memref<2x2x128xf32, #tpu.memory_space<vmem>>, vector<1x2x128xf32>
    %49 = vector.shape_cast %48 : vector<1x2x128xf32> to vector<2x128xf32>
    %cst_37 = arith.constant dense<0.000000e+00> : vector<2x128xf32>
    %50 = tpu.matmul %49, %3, %cst_37 {dimension_numbers = #tpu.dot_dimension_numbers<[1], [0], [0], [1], [0, 0, 1, 1], [], []>} : vector<2x128xf32>, vector<128x128xf32>, vector<2x128xf32> -> vector<2x128xf32>
    %c1_38 = arith.constant 1 : index
    %c0_39 = arith.constant 0 : index
    %c0_40 = arith.constant 0 : index
    %51 = vector.load %arg4[%c1_38, %c0_39, %c0_40] : memref<2x128x256xf32, #tpu.memory_space<vmem>>, vector<1x128x256xf32>
    %52 = vector.shape_cast %51 : vector<1x128x256xf32> to vector<128x256xf32>
    %cst_41 = arith.constant dense<0.000000e+00> : vector<2x256xf32>
    %53 = tpu.matmul %44, %52, %cst_41 {dimension_numbers = #tpu.dot_dimension_numbers<[1], [0], [0], [1], [0, 0, 1, 1], [], []>} : vector<2x128xf32>, vector<128x256xf32>, vector<2x256xf32> -> vector<2x256xf32>
    %c1_42 = arith.constant 1 : index
    %c0_43 = arith.constant 0 : index
    %c0_44 = arith.constant 0 : index
    %54 = vector.load %arg5[%c1_42, %c0_43, %c0_44] : memref<2x128x256xf32, #tpu.memory_space<vmem>>, vector<1x128x256xf32>
    %55 = vector.shape_cast %54 : vector<1x128x256xf32> to vector<128x256xf32>
    %cst_45 = arith.constant dense<0.000000e+00> : vector<2x256xf32>
    %56 = tpu.matmul %49, %55, %cst_45 {dimension_numbers = #tpu.dot_dimension_numbers<[1], [0], [0], [1], [0, 0, 1, 1], [], []>} : vector<2x128xf32>, vector<128x256xf32>, vector<2x256xf32> -> vector<2x256xf32>
    %57 = arith.addf %53, %56 : vector<2x256xf32>
    %c1_46 = arith.constant 1 : index
    %c0_47 = arith.constant 0 : index
    %c0_48 = arith.constant 0 : index
    %58 = vector.load %arg6[%c1_46, %c0_47, %c0_48] : memref<2x1x256xf32, #tpu.memory_space<vmem>>, vector<1x1x256xf32>
    %59 = vector.shape_cast %58 : vector<1x1x256xf32> to vector<1x256xf32>
    %60 = vector.broadcast %59 : vector<1x256xf32> to vector<2x256xf32>
    %61 = arith.addf %57, %60 : vector<2x256xf32>
    %62 = arith.negf %61 : vector<2x256xf32>
    %63 = math.exp %62 : vector<2x256xf32>
    %cst_49 = arith.constant 1.000000e+00 : f32
    %64 = vector.broadcast %cst_49 : f32 to vector<2x256xf32>
    %65 = arith.addf %64, %63 : vector<2x256xf32>
    %66 = arith.divf %64, %65 : vector<2x256xf32>
    %67 = vector.extract_strided_slice %66 {offsets = [0, 0], sizes = [2, 128], strides = [1, 1]} : vector<2x256xf32> to vector<2x128xf32>
    %68 = vector.extract_strided_slice %66 {offsets = [0, 128], sizes = [2, 128], strides = [1, 1]} : vector<2x256xf32> to vector<2x128xf32>
    %c1_50 = arith.constant 1 : index
    %c0_51 = arith.constant 0 : index
    %c0_52 = arith.constant 0 : index
    %69 = vector.load %arg7[%c1_50, %c0_51, %c0_52] : memref<2x128x128xf32, #tpu.memory_space<vmem>>, vector<1x128x128xf32>
    %70 = vector.shape_cast %69 : vector<1x128x128xf32> to vector<128x128xf32>
    %cst_53 = arith.constant dense<0.000000e+00> : vector<2x128xf32>
    %71 = tpu.matmul %44, %70, %cst_53 {dimension_numbers = #tpu.dot_dimension_numbers<[1], [0], [0], [1], [0, 0, 1, 1], [], []>} : vector<2x128xf32>, vector<128x128xf32>, vector<2x128xf32> -> vector<2x128xf32>
    %72 = arith.mulf %67, %50 : vector<2x128xf32>
    %c1_54 = arith.constant 1 : index
    %c0_55 = arith.constant 0 : index
    %c0_56 = arith.constant 0 : index
    %73 = vector.load %arg8[%c1_54, %c0_55, %c0_56] : memref<2x128x128xf32, #tpu.memory_space<vmem>>, vector<1x128x128xf32>
    %74 = vector.shape_cast %73 : vector<1x128x128xf32> to vector<128x128xf32>
    %cst_57 = arith.constant dense<0.000000e+00> : vector<2x128xf32>
    %75 = tpu.matmul %72, %74, %cst_57 {dimension_numbers = #tpu.dot_dimension_numbers<[1], [0], [0], [1], [0, 0, 1, 1], [], []>} : vector<2x128xf32>, vector<128x128xf32>, vector<2x128xf32> -> vector<2x128xf32>
    %76 = arith.addf %71, %75 : vector<2x128xf32>
    %c1_58 = arith.constant 1 : index
    %c0_59 = arith.constant 0 : index
    %c0_60 = arith.constant 0 : index
    %77 = vector.load %arg9[%c1_58, %c0_59, %c0_60] : memref<2x1x128xf32, #tpu.memory_space<vmem>>, vector<1x1x128xf32>
    %78 = vector.shape_cast %77 : vector<1x1x128xf32> to vector<1x128xf32>
    %79 = vector.broadcast %78 : vector<1x128xf32> to vector<2x128xf32>
    %80 = arith.addf %76, %79 : vector<2x128xf32>
    %81 = math.tanh %80 : vector<2x128xf32>
    %82 = arith.mulf %68, %49 : vector<2x128xf32>
    %cst_61 = arith.constant 1.000000e+00 : f32
    %83 = vector.broadcast %cst_61 : f32 to vector<2x128xf32>
    %84 = arith.subf %83, %68 : vector<2x128xf32>
    %85 = arith.mulf %84, %81 : vector<2x128xf32>
    %86 = arith.addf %82, %85 : vector<2x128xf32>
    %c1_62 = arith.constant 1 : index
    %c0_63 = arith.constant 0 : index
    %c0_64 = arith.constant 0 : index
    %87 = vector.load %arg11[%c1_62, %c0_63, %c0_64] : memref<2x2x128xf32, #tpu.memory_space<vmem>>, vector<1x2x128xf32>
    %88 = vector.shape_cast %87 : vector<1x2x128xf32> to vector<2x128xf32>
    %89 = vector.shape_cast %86 : vector<2x128xf32> to vector<1x2x128xf32>
    tpu.vector_store %arg11[%c1_62, %c0_63, %c0_64], %89 {strides = array<i32>} : memref<2x2x128xf32, #tpu.memory_space<vmem>>, vector<1x2x128xf32>,
    %c0_65 = arith.constant 0 : index
    %c0_66 = arith.constant 0 : index
    %c0_67 = arith.constant 0 : index
    %90 = vector.load %arg10[%c0_65, %c0_66, %c0_67] : memref<1x2x128xf32, #tpu.memory_space<vmem>>, vector<1x2x128xf32>
    %91 = vector.shape_cast %90 : vector<1x2x128xf32> to vector<2x128xf32>
    %92 = vector.shape_cast %86 : vector<2x128xf32> to vector<1x2x128xf32>
    tpu.vector_store %arg10[%c0_65, %c0_66, %c0_67], %92 {strides = array<i32>} : memref<1x2x128xf32, #tpu.memory_space<vmem>>, vector<1x2x128xf32>,
    return
  }
  func.func @transform_0(%arg0: i32) -> (i32, i32, i32) {
    %c0_i32 = arith.constant 0 : i32
    %c0_i32_0 = arith.constant 0 : i32
    %c0_i32_1 = arith.constant 0 : i32
    return %arg0, %c0_i32, %c0_i32_0 : i32, i32, i32
  }
  func.func @transform_1(%arg0: i32) -> (i32, i32, i32) {
    %c0_i32 = arith.constant 0 : i32
    %c0_i32_0 = arith.constant 0 : i32
    %c0_i32_1 = arith.constant 0 : i32
    %c0_i32_2 = arith.constant 0 : i32
    return %c0_i32, %c0_i32_0, %c0_i32_1 : i32, i32, i32
  }
  func.func @transform_2(%arg0: i32) -> (i32, i32) {
    %c0_i32 = arith.constant 0 : i32
    %c0_i32_0 = arith.constant 0 : i32
    %c0_i32_1 = arith.constant 0 : i32
    return %c0_i32, %c0_i32_0 : i32, i32
  }
  func.func @transform_3(%arg0: i32) -> (i32, i32, i32) {
    %c0_i32 = arith.constant 0 : i32
    %c0_i32_0 = arith.constant 0 : i32
    %c0_i32_1 = arith.constant 0 : i32
    %c0_i32_2 = arith.constant 0 : i32
    return %c0_i32, %c0_i32_0, %c0_i32_1 : i32, i32, i32
  }
  func.func @transform_4(%arg0: i32) -> (i32, i32, i32) {
    %c0_i32 = arith.constant 0 : i32
    %c0_i32_0 = arith.constant 0 : i32
    %c0_i32_1 = arith.constant 0 : i32
    %c0_i32_2 = arith.constant 0 : i32
    return %c0_i32, %c0_i32_0, %c0_i32_1 : i32, i32, i32
  }
  func.func @transform_5(%arg0: i32) -> (i32, i32, i32) {
    %c0_i32 = arith.constant 0 : i32
    %c0_i32_0 = arith.constant 0 : i32
    %c0_i32_1 = arith.constant 0 : i32
    %c0_i32_2 = arith.constant 0 : i32
    return %c0_i32, %c0_i32_0, %c0_i32_1 : i32, i32, i32
  }
  func.func @transform_6(%arg0: i32) -> (i32, i32, i32) {
    %c0_i32 = arith.constant 0 : i32
    %c0_i32_0 = arith.constant 0 : i32
    %c0_i32_1 = arith.constant 0 : i32
    %c0_i32_2 = arith.constant 0 : i32
    return %c0_i32, %c0_i32_0, %c0_i32_1 : i32, i32, i32
  }
  func.func @transform_7(%arg0: i32) -> (i32, i32, i32) {
    %c0_i32 = arith.constant 0 : i32
    %c0_i32_0 = arith.constant 0 : i32
    %c0_i32_1 = arith.constant 0 : i32
    %c0_i32_2 = arith.constant 0 : i32
    return %c0_i32, %c0_i32_0, %c0_i32_1 : i32, i32, i32
  }
  func.func @transform_8(%arg0: i32) -> (i32, i32, i32) {
    %c0_i32 = arith.constant 0 : i32
    %c0_i32_0 = arith.constant 0 : i32
    %c0_i32_1 = arith.constant 0 : i32
    %c0_i32_2 = arith.constant 0 : i32
    return %c0_i32, %c0_i32_0, %c0_i32_1 : i32, i32, i32
  }
  func.func @transform_9(%arg0: i32) -> (i32, i32, i32) {
    %c0_i32 = arith.constant 0 : i32
    %c0_i32_0 = arith.constant 0 : i32
    %c0_i32_1 = arith.constant 0 : i32
    return %arg0, %c0_i32, %c0_i32_0 : i32, i32, i32
  }
  func.func @transform_10(%arg0: i32) -> (i32, i32, i32) {
    %c0_i32 = arith.constant 0 : i32
    %c0_i32_0 = arith.constant 0 : i32
    %c0_i32_1 = arith.constant 0 : i32
    %c0_i32_2 = arith.constant 0 : i32
    return %c0_i32, %c0_i32_0, %c0_i32_1 : i32, i32, i32
  }
}

</mosaic_0001>

<bundles_post_ra>
// kernel: _encoder_seq_pallas_impl.1
= control target key start
LH: loop header
LB: loop body
LE: loop exit
PB: predicated region body
PF: predicated region fallthrough
CT: control target
= control target key end

     0   :  { %16 = vsyncpa [#allocation3], 0  ;;  %s1264_s0 = inlined_call_operand.hbm [shape: f32[1,2,128], index: 0, kind: input, shape index: {}]   ;;  %s1265_s1 = inlined_call_operand.hbm [shape: f32[2,2,128], index: 1, kind: input, shape index: {}]   ;;  %s1266_s2 = inlined_call_operand.hbm [shape: f32[128,128], index: 2, kind: input, shape index: {}]   ;;  %s1267_s3 = inlined_call_operand.hbm [shape: f32[2,128,256], index: 3, kind: input, shape index: {}]   ;;  %s1268_s4 = inlined_call_operand.hbm [shape: f32[2,128,256], index: 4, kind: input, shape index: {}]   ;;  %s1269_s5 = inlined_call_operand.vmem [shape: f32[2,1,256], index: 5, kind: input, shape index: {}]   ;;  %s1270_s6 = inlined_call_operand.hbm [shape: f32[2,128,128], index: 6, kind: input, shape index: {}]   ;;  %s1271_s7 = inlined_call_operand.hbm [shape: f32[2,128,128], index: 7, kind: input, shape index: {}]   ;;  %s1272_s8 = inlined_call_operand.vmem [shape: f32[2,1,128], index: 8, kind: input, shape index: {}]   ;;  %s1273_s9 = inlined_call_operand.hbm [shape: f32[1,2,128], index: 9, kind: output, shape index: {0}]   ;;  %s1274_s10 = inlined_call_operand.hbm [shape: f32[2,2,128], index: 10, kind: output, shape index: {1}]  }
   0x1   :  { %17 = vsyncpa [#allocation6], 0 }
   0x2   :  { %18 = vsyncpa [#allocation9], 0 }
   0x3   :  { %19 = vsyncpa [#allocation12], 0 }
   0x4   :  { %20 = vsyncpa [#allocation4], 0  ;;  %s37_s15 = sshll.u32 %s1265_s1, 4  ;;  %s38_s15 = int_to_ptr.hbm [resolvable:$true] %s37_s15 }
   0x5   :  { %21 = vsyncpa [#allocation16], 0  ;;  %s1075_s16 = smov [#allocation5]   ;;  %s63_s20 = sshll.u32 %s1267_s3, 4  ;;  %s64_s20 = int_to_ptr.hbm [resolvable:$true] %s63_s20 }
   0x6   :  { %s39_s17 = sshll.u32 %s1075_s16, 4  ;;  %s1076_s21 = smov 32   ;;  %s40_s17 = int_to_ptr.vmem [resolvable:$true] %s39_s17 }
   0x7   :  { %s1077_s22 = smov 2   ;;  %s1078_s23 = smov [#allocation8]  }
   0x8   :  { %45 = dma.hbm_to_vmem [thread:$0]  %s38_s15, 64, %s40_s17, [#allocation6], %s1076_s21, %s1076_s21, %s1077_s22  }
   0x9   :  { %s65_s24 = sshll.u32 %s1078_s23, 4  ;;  %s1079_s1 = smov 256   ;;  %s66_s24 = int_to_ptr.vmem [resolvable:$true] %s65_s24 }
   0xa   :  { %s1080_s25 = smov 16   ;;  %s91_s3 = sshll.u32 %s1270_s6, 4  ;;  %s92_s3 = int_to_ptr.hbm [resolvable:$true] %s91_s3 }
   0xb   :  { %71 = dma.hbm_to_vmem [thread:$0]  %s64_s20, 8192, %s66_s24, [#allocation9], %s1079_s1, %s1079_s1, %s1080_s25  }
   0xc   :  { %s1081_s28 = smov [#allocation11]   ;;  %s27_s12 = sshll.u32 %s1264_s0, 4  ;;  %s28_s12 = int_to_ptr.hbm [resolvable:$true] %s27_s12 }
   0xd   :  { %s93_s29 = sshll.u32 %s1081_s28, 4  ;;  %s1082_s13 = smov 128   ;;  %s94_s29 = int_to_ptr.vmem [resolvable:$true] %s93_s29 }
   0xe   :  { %s1083_s14 = smov 8   ;;  %s1084_s15 = smov [#allocation2]  }
   0xf   :  { %99 = dma.hbm_to_vmem [thread:$0]  %s92_s3, 4096, %s94_s29, [#allocation12], %s1082_s13, %s1082_s13, %s1083_s14  }
  0x10   :  { %s29_s16 = sshll.u32 %s1084_s15, 4  ;;  %s50_s19 = sshll.u32 %s1266_s2, 4  ;;  %s30_s16 = int_to_ptr.vmem [resolvable:$true] %s29_s16  ;;  %s51_s19 = int_to_ptr.hbm [resolvable:$true] %s50_s19 }
  0x11   :  { %32 = dma.hbm_to_vmem [thread:$0]  %s28_s12, 32, %s30_s16, [#allocation3]  }
  0x12   :  { %s76_s23 = sshll.u32 %s1268_s4, 4  ;;  %s1085_s24 = smov [#allocation7]   ;;  %s77_s23 = int_to_ptr.hbm [resolvable:$true] %s76_s23 }
  0x13   :  { %s52_s26 = sshll.u32 %s1085_s24, 4  ;;  %s1086_s0 = smov [#allocation10]   ;;  %s53_s26 = int_to_ptr.vmem [resolvable:$true] %s52_s26 }
  0x14   :  { %58 = dma.hbm_to_vmem [thread:$0]  %s51_s19, 2048, %s53_s26, [#allocation6], %s1082_s13, %s1082_s13, %s1083_s14  }
  0x15   :  { %s78_s27 = sshll.u32 %s1086_s0, 4  ;;  %s104_s29 = sshll.u32 %s1271_s7, 4  ;;  %s79_s27 = int_to_ptr.vmem [resolvable:$true] %s78_s27  ;;  %s105_s29 = int_to_ptr.hbm [resolvable:$true] %s104_s29 }
  0x16   :  { %84 = dma.hbm_to_vmem [thread:$0]  %s77_s23, 8192, %s79_s27, [#allocation9], %s1079_s1, %s1079_s1, %s1080_s25  }
  0x17   :  { %s1087_s2 = smov [#allocation13]  }
  0x18   :  { %s106_s30 = sshll.u32 %s1087_s2, 4  ;;  %s107_s30 = int_to_ptr.vmem [resolvable:$true] %s106_s30 }
  0x19   :  { %112 = dma.hbm_to_vmem [thread:$0]  %s105_s29, 4096, %s107_s30, [#allocation12], %s1082_s13, %s1082_s13, %s1083_s14  }
  0x1a   :  { %1063 = dma.done.wait [#allocation3], 32  }
  0x1b   :  { %1064 = vsyncadd [#allocation3], 4294967264 }
  0x1c   :  { %1065 = dma.done.wait [#allocation6], 2112  }
  0x1d   :  { %1066 = vsyncadd [#allocation6], 4294965184 }
  0x1e   :  { %1067 = dma.done.wait [#allocation9], 16384  }
  0x1f   :  { %1068 = vsyncadd [#allocation9], 4294950912 }
  0x20   :  { %1069 = dma.done.wait [#allocation12], 8192  }
  0x21   :  { %1070 = vsyncadd [#allocation12], 4294959104  ;;  %v219_v0 = vld [vmem:[#allocation8 + $0xf0] sm:$0xff]  ;;  %v217_v1 = vld [vmem:[#allocation8 + $0xe0] sm:$0xff]  ;;  %s1088_s14 = smov [#allocation14]   ;;  %s773_s17 = sshll.u32 %s1273_s9, 4  ;;  %s774_s17 = int_to_ptr.hbm [resolvable:$true] %s773_s17 }
  0x22   :  { %293 = vmatpush.msra.mxu3 %v219_v0  ;;  %v251_v2 = vld [vmem:[#allocation10 + $0xf0] sm:$0xff]  ;;  %v249_v3 = vld [vmem:[#allocation10 + $0xe0] sm:$0xff]  ;;  %v147_v14 = vld [vmem:[#allocation5] sm:$0x3]  ;;  %s771_s15 = sshll.u32 %s1088_s14, 4  ;;  %s1089_s18 = smov [#allocation15]   ;;  %s772_s15 = int_to_ptr.vmem [resolvable:$true] %s771_s15 }
  0x23   :  { %v215_v4 = vld [vmem:[#allocation8 + $0xd0] sm:$0xff]  ;;  %253 = vmatpush.msra.mxu1 %v251_v2  ;;  %v213_v6 = vld [vmem:[#allocation8 + $0xc0] sm:$0xff]  ;;  %v1175_v15 = vld [vmem:[#allocation7 + $0x78] sm:$0xff]  ;;  %149 = vst [vmem:[#allocation15] sm:$0x3] %v147_v14  ;;  %s781_s19 = sshll.u32 %s1089_s18, 4  ;;  %s782_s19 = int_to_ptr.vmem [resolvable:$true] %s781_s19 }
  0x24   :  { %294 = vmatpush.msra.mxu3 %v217_v1  ;;  %v247_v5 = vld [vmem:[#allocation10 + $0xd0] sm:$0xff]  ;;  %v245_v7 = vld [vmem:[#allocation10 + $0xc0] sm:$0xff]  ;;  %169 = vmatpush.msra.mxu0 %v1175_v15  ;;  %v1180_v19 = vld [vmem:[#allocation7 + $0x68] sm:$0xff]  ;;  %s783_s23 = sshll.u32 %s1274_s10, 4  ;;  %s784_s23 = int_to_ptr.hbm [resolvable:$true] %s783_s23 }
  0x25   :  { %254 = vmatpush.msra.mxu1 %v249_v3  ;;  %v211_v8 = vld [vmem:[#allocation8 + $0xb0] sm:$0xff]  ;;  %v209_v10 = vld [vmem:[#allocation8 + $0xa0] sm:$0xff]  ;;  %v252_v24 = vld [vmem:[#allocation10 + $0xf8] sm:$0xff] }
  0x26   :  { %295 = vmatpush.msra.mxu3 %v215_v4  ;;  %v243_v9 = vld [vmem:[#allocation10 + $0xb0] sm:$0xff]  ;;  %v241_v11 = vld [vmem:[#allocation10 + $0xa0] sm:$0xff]  ;;  %v1186_v26 = vld [vmem:[#allocation7 + $0x58] sm:$0xff]  ;;  %273 = vmatpush.msra.mxu2 %v252_v24 }
  0x27   :  { %255 = vmatpush.msra.mxu1 %v247_v5  ;;  %v207_v12 = vld [vmem:[#allocation8 + $0x90] sm:$0xff]  ;;  %v205_v17 = vld [vmem:[#allocation8 + $0x80] sm:$0xff]  ;;  %v250_v27 = vld [vmem:[#allocation10 + $0xe8] sm:$0xff] }
  0x28   :  { %296 = vmatpush.msra.mxu3 %v213_v6  ;;  %v239_v13 = vld [vmem:[#allocation10 + $0x90] sm:$0xff]  ;;  %v237_v18 = vld [vmem:[#allocation10 + $0x80] sm:$0xff]  ;;  %v248_v29 = vld [vmem:[#allocation10 + $0xd8] sm:$0xff]  ;;  %274 = vmatpush.msra.mxu2 %v250_v27 }
  0x29   :  { %256 = vmatpush.msra.mxu1 %v245_v7  ;;  %v1177_v16 = vld [vmem:[#allocation7 + $0x70] sm:$0xff]  ;;  %v1183_v22 = vld [vmem:[#allocation7 + $0x60] sm:$0xff]  ;;  %v246_v33 = vld [vmem:[#allocation10 + $0xc8] sm:$0xff] }
  0x2a   :  { %297 = vmatpush.msra.mxu3 %v211_v8  ;;  %v203_v20 = vld [vmem:[#allocation8 + $0x70] sm:$0xff]  ;;  %170 = vmatpush.msra.mxu0 %v1177_v16  ;;  %v201_v23 = vld [vmem:[#allocation8 + $0x60] sm:$0xff]  ;;  %v1192_v36 = vld [vmem:[#allocation7 + $0x48] sm:$0xff] }
  0x2b   :  { %257 = vmatpush.msra.mxu1 %v243_v9  ;;  %v235_v21 = vld [vmem:[#allocation10 + $0x70] sm:$0xff]  ;;  %v233_v25 = vld [vmem:[#allocation10 + $0x60] sm:$0xff]  ;;  %275 = vmatpush.msra.mxu2 %v248_v29  ;;  %v244_v37 = vld [vmem:[#allocation10 + $0xb8] sm:$0xff] }
  0x2c   :  { %298 = vmatpush.msra.mxu3 %v209_v10  ;;  %171 = vmatpush.msra.mxu0 %v1180_v19  ;;  %v199_v28 = vld [vmem:[#allocation8 + $0x50] sm:$0xff]  ;;  %v197_v32 = vld [vmem:[#allocation8 + $0x40] sm:$0xff]  ;;  %v242_v41 = vld [vmem:[#allocation10 + $0xa8] sm:$0xff] }
  0x2d   :  { %258 = vmatpush.msra.mxu1 %v241_v11  ;;  %v231_v30 = vld [vmem:[#allocation10 + $0x50] sm:$0xff]  ;;  %v229_v35 = vld [vmem:[#allocation10 + $0x40] sm:$0xff]  ;;  %276 = vmatpush.msra.mxu2 %v246_v33  ;;  %v1198_v43 = vld [vmem:[#allocation7 + $0x38] sm:$0xff] }
  0x2e   :  { %299 = vmatpush.msra.mxu3 %v207_v12  ;;  %172 = vmatpush.msra.mxu0 %v1183_v22  ;;  %v1189_v31 = vld [vmem:[#allocation7 + $0x50] sm:$0xff]  ;;  %v1195_v39 = vld [vmem:[#allocation7 + $0x40] sm:$0xff]  ;;  %v240_v45 = vld [vmem:[#allocation10 + $0x98] sm:$0xff] }
  0x2f   :  { %259 = vmatpush.msra.mxu1 %v239_v13  ;;  %v195_v34 = vld [vmem:[#allocation8 + $0x30] sm:$0xff]  ;;  %v193_v40 = vld [vmem:[#allocation8 + $0x20] sm:$0xff]  ;;  %277 = vmatpush.msra.mxu2 %v244_v37  ;;  %v238_v49 = vld [vmem:[#allocation10 + $0x88] sm:$0xff] }
  0x30   :  { %300 = vmatpush.msra.mxu3 %v205_v17  ;;  %173 = vmatpush.msra.mxu0 %v1186_v26  ;;  %v227_v38 = vld [vmem:[#allocation10 + $0x30] sm:$0xff]  ;;  %v225_v42 = vld [vmem:[#allocation10 + $0x20] sm:$0xff]  ;;  %v1204_v50 = vld [vmem:[#allocation2] sm:$0x3] }
  0x31   :  { %260 = vmatpush.msra.mxu1 %v237_v18  ;;  %v191_v44 = vld [vmem:[#allocation8 + $0x10] sm:$0xff]  ;;  %278 = vmatpush.msra.mxu2 %v242_v41  ;;  %v189_v48 = vld [vmem:[#allocation8] sm:$0xff]  ;;  %v156_v53 = vld [vmem:[#allocation7 + $0x28] sm:$0xff] }
  0x32   :  { %301 = vmatpush.msra.mxu3 %v203_v20  ;;  %174 = vmatpush.msra.mxu0 %v1189_v31  ;;  %v223_v46 = vld [vmem:[#allocation10 + $0x10] sm:$0xff]  ;;  %v221_v51 = vld [vmem:[#allocation10] sm:$0xff]  ;;  %v236_v54 = vld [vmem:[#allocation10 + $0x78] sm:$0xff] }
  0x33   :  { %261 = vmatpush.msra.mxu1 %v235_v21  ;;  %v1201_v47 = vld [vmem:[#allocation7 + $0x30] sm:$0xff]  ;;  %279 = vmatpush.msra.mxu2 %v240_v45  ;;  %v1206_v52 = vld [vmem:[#allocation15] sm:$0x3]  ;;  %v234_v56 = vld [vmem:[#allocation10 + $0x68] sm:$0xff] }
  0x34   :  { %302 = vmatpush.msra.mxu3 %v201_v23  ;;  %175 = vmatpush.msra.mxu0 %v1192_v36  ;;  %v155_v55 = vld [vmem:[#allocation7 + $0x20] sm:$0xff]  ;;  %v154_v57 = vld [vmem:[#allocation7 + $0x18] sm:$0xff]  ;;  %v153_v59 = vld [vmem:[#allocation7 + $0x10] sm:$0xff] }
  0x35   :  { %262 = vmatpush.msra.mxu1 %v233_v25  ;;  %280 = vmatpush.msra.mxu2 %v238_v49  ;;  %v232_v58 = vld [vmem:[#allocation10 + $0x58] sm:$0xff]  ;;  %v230_v60 = vld [vmem:[#allocation10 + $0x48] sm:$0xff]  ;;  %v151_v63 = vld [vmem:[#allocation7] sm:$0xff] }
  0x36   :  { %303 = vmatpush.msra.mxu3 %v199_v28  ;;  %176 = vmatpush.msra.mxu0 %v1195_v39  ;;  %v152_v61 = vld [vmem:[#allocation7 + $0x8] sm:$0xff]  ;;  %v228_v62 = vld [vmem:[#allocation10 + $0x38] sm:$0xff]  ;;  %v393_v20 = vld [vmem:[#allocation11 + $0x70] sm:$0xff] }
  0x37   :  { %263 = vmatpush.msra.mxu1 %v231_v30  ;;  %281 = vmatpush.msra.mxu2 %v236_v54  ;;  %v226_v0 = vld [vmem:[#allocation10 + $0x28] sm:$0xff]  ;;  %v220_v1 = vld [vmem:[#allocation8 + $0xf8] sm:$0xff]  ;;  %v391_v23 = vld [vmem:[#allocation11 + $0x60] sm:$0xff] }
  0x38   :  { %304 = vmatpush.msra.mxu3 %v197_v32  ;;  %177 = vmatpush.msra.mxu0 %v1198_v43  ;;  %v224_v2 = vld [vmem:[#allocation10 + $0x18] sm:$0xff]  ;;  %v218_v3 = vld [vmem:[#allocation8 + $0xe8] sm:$0xff]  ;;  %v410_v24 = vld [vmem:[#allocation13 + $0x70] sm:$0xff] }
  0x39   :  { %264 = vmatpush.msra.mxu1 %v229_v35  ;;  %282 = vmatpush.msra.mxu2 %v234_v56  ;;  %v222_v4 = vld [vmem:[#allocation10 + $0x8] sm:$0xff]  ;;  %v216_v5 = vld [vmem:[#allocation8 + $0xd8] sm:$0xff]  ;;  %v389_v27 = vld [vmem:[#allocation11 + $0x50] sm:$0xff] }
  0x3a   :  { %305 = vmatpush.msra.mxu3 %v195_v34  ;;  %178 = vmatpush.msra.mxu0 %v1201_v47  ;;  %v394_v6 = vld [vmem:[#allocation11 + $0x78] sm:$0xff]  ;;  %v214_v7 = vld [vmem:[#allocation8 + $0xc8] sm:$0xff]  ;;  %v408_v28 = vld [vmem:[#allocation13 + $0x60] sm:$0xff] }
  0x3b   :  { %265 = vmatpush.msra.mxu1 %v227_v38  ;;  %283 = vmatpush.msra.mxu2 %v232_v58  ;;  %v212_v8 = vld [vmem:[#allocation8 + $0xb8] sm:$0xff]  ;;  %v210_v9 = vld [vmem:[#allocation8 + $0xa8] sm:$0xff]  ;;  %v406_v32 = vld [vmem:[#allocation13 + $0x50] sm:$0xff] }
  0x3c   :  { %306 = vmatpush.msra.mxu3 %v193_v40  ;;  %179 = vmatpush.msra.mxu0 %v156_v53  ;;  %v208_v10 = vld [vmem:[#allocation8 + $0x98] sm:$0xff]  ;;  %v206_v11 = vld [vmem:[#allocation8 + $0x88] sm:$0xff]  ;;  %v385_v35 = vld [vmem:[#allocation11 + $0x30] sm:$0xff] }
  0x3d   :  { %266 = vmatpush.msra.mxu1 %v225_v42  ;;  %284 = vmatpush.msra.mxu2 %v230_v60  ;;  %v204_v12 = vld [vmem:[#allocation8 + $0x78] sm:$0xff]  ;;  %v202_v13 = vld [vmem:[#allocation8 + $0x68] sm:$0xff]  ;;  %v402_v40 = vld [vmem:[#allocation13 + $0x30] sm:$0xff] }
  0x3e   :  { %307 = vmatpush.msra.mxu3 %v191_v44  ;;  %180 = vmatpush.msra.mxu0 %v155_v55  ;;  %v200_v14 = vld [vmem:[#allocation8 + $0x58] sm:$0xff]  ;;  %v194_v17 = vld [vmem:[#allocation8 + $0x28] sm:$0xff]  ;;  %v400_v44 = vld [vmem:[#allocation13 + $0x20] sm:$0xff] }
  0x3f   :  { %267 = vmatpush.msra.mxu1 %v223_v46  ;;  %285 = vmatpush.msra.mxu2 %v228_v62  ;;  %v192_v18 = vld [vmem:[#allocation8 + $0x18] sm:$0xff]  ;;  %v392_v21 = vld [vmem:[#allocation11 + $0x68] sm:$0xff] }
  0x40   :  { %308 = vmatpush.msra.mxu3 %v189_v48  ;;  %181 = vmatpush.msra.mxu0 %v154_v57  ;;  %v390_v25 = vld [vmem:[#allocation11 + $0x58] sm:$0xff]  ;;  %v388_v29 = vld [vmem:[#allocation11 + $0x48] sm:$0xff]  ;;  %v398_v48 = vld [vmem:[#allocation13 + $0x10] sm:$0xff] }
  0x41   :  { %309 = vmatmul.f32.vlgmr.msra.gmra.mxu3 %v1204_v50  ;;  %268 = vmatpush.msra.mxu1 %v221_v51  ;;  %v407_v30 = vld [vmem:[#allocation13 + $0x58] sm:$0xff]  ;;  %v405_v34 = vld [vmem:[#allocation13 + $0x48] sm:$0xff] }
  0x42   :  { %269 = vmatmul.f32.vlgmr.msra.gmra.mxu1 %v1206_v52  ;;  %465 = vmatpush.msrb.mxu3 %v1175_v15  ;;  %v198_v15 = vld [vmem:[#allocation8 + $0x48] sm:$0xff]  ;;  %v386_v33 = vld [vmem:[#allocation11 + $0x38] sm:$0xff] }
  0x43   :  { %182 = vmatpush.msra.mxu0 %v153_v59  ;;  %286 = vmatpush.msra.mxu2 %v226_v0  ;;  %v384_v37 = vld [vmem:[#allocation11 + $0x28] sm:$0xff]  ;;  %v403_v38 = vld [vmem:[#allocation13 + $0x38] sm:$0xff] }
  0x44   :  { %466 = vmatpush.msrb.mxu3 %v1177_v16  ;;  %v196_v16 = vld [vmem:[#allocation8 + $0x38] sm:$0xff]  ;;  %v401_v42 = vld [vmem:[#allocation13 + $0x28] sm:$0xff] }
  0x45   :  { %183 = vmatpush.msra.mxu0 %v152_v61  ;;  %287 = vmatpush.msra.mxu2 %v224_v2  ;;  %v382_v41 = vld [vmem:[#allocation11 + $0x18] sm:$0xff]  ;;  %v380_v45 = vld [vmem:[#allocation11 + $0x8] sm:$0xff] }
  0x46   :  { %467 = vmatpush.msrb.mxu3 %v1180_v19  ;;  %v190_v19 = vld [vmem:[#allocation8 + $0x8] sm:$0xff]  ;;  %v399_v46 = vld [vmem:[#allocation13 + $0x18] sm:$0xff] }
  0x47   :  { %184 = vmatpush.msra.mxu0 %v151_v63  ;;  %288 = vmatpush.msra.mxu2 %v222_v4  ;;  %v1227_v49 = vld [vmem:[%s1269_s5] sm:$0x3]  ;;  %v397_v54 = vld [vmem:[#allocation13 + $0x8] sm:$0xff] }
  0x48   :  { %468 = vmatpush.msrb.mxu3 %v1183_v22  ;;  %185 = vmatmul.f32.vlgmr.msra.gmra.mxu0 %v1206_v52  ;;  %v411_v22 = vld [vmem:[#allocation13 + $0x78] sm:$0xff]  ;;  %v548_v60 = vld [vmem:[#allocation10 + $0x1e8] sm:$0xff] }
  0x49   :  { %313 = vmatpush.msrb.mxu0 %v220_v1  ;;  %289 = vmatmul.f32.vlgmr.msra.gmra.mxu2 %v1206_v52  ;;  %v546_v62 = vld [vmem:[#allocation10 + $0x1d8] sm:$0xff] }
  0x4a   :  { %469 = vmatpush.msrb.mxu3 %v1186_v26  ;;  %432 = vmatpush.msrb.mxu2 %v394_v6  ;;  %v409_v26 = vld [vmem:[#allocation13 + $0x68] sm:$0xff] }
  0x4b   :  { %314 = vmatpush.msrb.mxu0 %v218_v3  ;;  %412 = vmatpush.msrb.mxu1 %v411_v22  ;;  %v512_v22 = vld [vmem:[#allocation8 + $0x1d0] sm:$0xff] }
  0x4c   :  { %470 = vmatpush.msrb.mxu3 %v1189_v31  ;;  %433 = vmatpush.msrb.mxu2 %v393_v20  ;;  %v387_v31 = vld [vmem:[#allocation11 + $0x40] sm:$0xff] }
  0x4d   :  { %315 = vmatpush.msrb.mxu0 %v216_v5  ;;  %413 = vmatpush.msrb.mxu1 %v410_v24  ;;  %v514_v20 = vld [vmem:[#allocation8 + $0x1e0] sm:$0xff]  ;;  %v513_v24 = vld [vmem:[#allocation8 + $0x1d8] sm:$0xff] }
  0x4e   :  { %471 = vmatpush.msrb.mxu3 %v1192_v36  ;;  %434 = vmatpush.msrb.mxu2 %v392_v21  ;;  %v404_v36 = vld [vmem:[#allocation13 + $0x40] sm:$0xff]  ;;  %v515_v21 = vld [vmem:[#allocation8 + $0x1e8] sm:$0xff] }
  0x4f   :  { %316 = vmatpush.msrb.mxu0 %v214_v7  ;;  %414 = vmatpush.msrb.mxu1 %v409_v26  ;;  %v510_v26 = vld [vmem:[#allocation8 + $0x1c0] sm:$0xff] }
  0x50   :  { %472 = vmatpush.msrb.mxu3 %v1195_v39  ;;  %435 = vmatpush.msrb.mxu2 %v391_v23  ;;  %v383_v39 = vld [vmem:[#allocation11 + $0x20] sm:$0xff]  ;;  %v532_v23 = vld [vmem:[#allocation10 + $0x168] sm:$0xff] }
  0x51   :  { %317 = vmatpush.msrb.mxu0 %v212_v8  ;;  %415 = vmatpush.msrb.mxu1 %v408_v28  ;;  %v511_v28 = vld [vmem:[#allocation8 + $0x1c8] sm:$0xff] }
  0x52   :  { %473 = vmatpush.msrb.mxu3 %v1198_v43  ;;  %436 = vmatpush.msrb.mxu2 %v390_v25  ;;  %v381_v43 = vld [vmem:[#allocation11 + $0x10] sm:$0xff] }
  0x53   :  { %318 = vmatpush.msrb.mxu0 %v210_v9  ;;  %416 = vmatpush.msrb.mxu1 %v407_v30  ;;  %v549_v25 = vld [vmem:[#allocation10 + $0x1f0] sm:$0xff] }
  0x54   :  { %474 = vmatpush.msrb.mxu3 %v1201_v47  ;;  %437 = vmatpush.msrb.mxu2 %v389_v27  ;;  %v379_v47 = vld [vmem:[#allocation11] sm:$0xff]  ;;  %v530_v27 = vld [vmem:[#allocation10 + $0x158] sm:$0xff]  ;;  %v508_v30 = vld [vmem:[#allocation8 + $0x1b0] sm:$0xff] }
  0x55   :  { %319 = vmatpush.msrb.mxu0 %v208_v10  ;;  %417 = vmatpush.msrb.mxu1 %v406_v32  ;;  %v528_v32 = vld [vmem:[#allocation10 + $0x148] sm:$0xff] }
  0x56   :  { %475 = vmatpush.msrb.mxu3 %v156_v53  ;;  %438 = vmatpush.msrb.mxu2 %v388_v29  ;;  %v335_v53 = vperm.slane %v1227_v49, 0  ;;  %v547_v29 = vld [vmem:[#allocation10 + $0x1e0] sm:$0xff] }
  0x57   :  { %320 = vmatpush.msrb.mxu0 %v206_v11  ;;  %418 = vmatpush.msrb.mxu1 %v405_v34  ;;  %v506_v34 = vld [vmem:[#allocation8 + $0x1a0] sm:$0xff] }
  0x58   :  { %476 = vmatpush.msrb.mxu3 %v155_v55  ;;  %439 = vmatpush.msrb.mxu2 %v387_v31  ;;  %v545_v31 = vld [vmem:[#allocation10 + $0x1d0] sm:$0xff] }
  0x59   :  { %321 = vmatpush.msrb.mxu0 %v204_v12  ;;  %419 = vmatpush.msrb.mxu1 %v404_v36  ;;  %v540_v12 = vld [vmem:[#allocation10 + $0x1a8] sm:$0xff]  ;;  %v526_v36 = vld [vmem:[#allocation10 + $0x138] sm:$0xff] }
  0x5a   :  { %477 = vmatpush.msrb.mxu3 %v154_v57  ;;  %440 = vmatpush.msrb.mxu2 %v386_v33  ;;  %v396_v57 = vld [vmem:[#allocation13] sm:$0xff]  ;;  %v509_v33 = vld [vmem:[#allocation8 + $0x1b8] sm:$0xff] }
  0x5b   :  { %322 = vmatpush.msrb.mxu0 %v202_v13  ;;  %420 = vmatpush.msrb.mxu1 %v403_v38  ;;  %v538_v13 = vld [vmem:[#allocation10 + $0x198] sm:$0xff]  ;;  %v504_v38 = vld [vmem:[#allocation8 + $0x190] sm:$0xff] }
  0x5c   :  { %478 = vmatpush.msrb.mxu3 %v153_v59  ;;  %441 = vmatpush.msrb.mxu2 %v385_v35  ;;  %v550_v59 = vld [vmem:[#allocation10 + $0x1f8] sm:$0xff]  ;;  %v543_v35 = vld [vmem:[#allocation10 + $0x1c0] sm:$0xff] }
  0x5d   :  { %323 = vmatpush.msrb.mxu0 %v200_v14  ;;  %421 = vmatpush.msrb.mxu1 %v402_v40  ;;  %v524_v40 = vld [vmem:[#allocation10 + $0x128] sm:$0xff] }
  0x5e   :  { %479 = vmatpush.msrb.mxu3 %v152_v61  ;;  %442 = vmatpush.msrb.mxu2 %v384_v37  ;;  %v507_v37 = vld [vmem:[#allocation8 + $0x1a8] sm:$0xff] }
  0x5f   :  { %324 = vmatpush.msrb.mxu0 %v198_v15  ;;  %422 = vmatpush.msrb.mxu1 %v401_v42  ;;  %v502_v42 = vld [vmem:[#allocation8 + $0x180] sm:$0xff] }
  0x60   :  { %480 = vmatpush.msrb.mxu3 %v151_v63  ;;  %443 = vmatpush.msrb.mxu2 %v383_v39  ;;  %v544_v63 = vld [vmem:[#allocation10 + $0x1c8] sm:$0xff]  ;;  %v541_v39 = vld [vmem:[#allocation10 + $0x1b0] sm:$0xff] }
  0x61   :  { %325 = vmatpush.msrb.mxu0 %v196_v16  ;;  %423 = vmatpush.msrb.mxu1 %v400_v44  ;;  %v536_v16 = vld [vmem:[#allocation10 + $0x188] sm:$0xff] }
  0x62   :  { %444 = vmatpush.msrb.mxu2 %v382_v41  ;;  %v505_v41 = vld [vmem:[#allocation8 + $0x198] sm:$0xff]  ;;  %v503_v44 = vld [vmem:[#allocation8 + $0x188] sm:$0xff] }
  0x63   :  { %326 = vmatpush.msrb.mxu0 %v194_v17  ;;  %424 = vmatpush.msrb.mxu1 %v399_v46  ;;  %v516_v17 = vld [vmem:[#allocation8 + $0x1f0] sm:$0xff]  ;;  %v694_v46 = vld [vmem:[#allocation11 + $0xf8] sm:$0xff] }
  0x64   :  { %445 = vmatpush.msrb.mxu2 %v381_v43  ;;  %v522_v43 = vld [vmem:[#allocation10 + $0x118] sm:$0xff] }
  0x65   :  { %327 = vmatpush.msrb.mxu0 %v192_v18  ;;  %425 = vmatpush.msrb.mxu1 %v398_v48  ;;  %v534_v18 = vld [vmem:[#allocation10 + $0x178] sm:$0xff]  ;;  %v692_v48 = vld [vmem:[#allocation11 + $0xe8] sm:$0xff] }
  0x66   :  { %446 = vmatpush.msrb.mxu2 %v380_v45  ;;  %v520_v45 = vld [vmem:[#allocation10 + $0x108] sm:$0xff] }
  0x67   :  { %328 = vmatpush.msrb.mxu0 %v190_v19  ;;  %426 = vmatpush.msrb.mxu1 %v397_v54  ;;  %v517_v19 = vld [vmem:[#allocation8 + $0x1f8] sm:$0xff]  ;;  %v689_v54 = vld [vmem:[#allocation11 + $0xd0] sm:$0xff] }
  0x68   :  { %329 = vmatmul.f32.vlgmr.msrb.gmra.mxu0 %v1204_v50  ;;  %447 = vmatpush.msrb.mxu2 %v379_v47  ;;  %v693_v47 = vld [vmem:[#allocation11 + $0xf0] sm:$0xff] }
  0x69   :  { %448 = vmatmul.f32.vlgmr.msrb.gmra.mxu2 %v1204_v50  ;;  %427 = vmatpush.msrb.mxu1 %v396_v57  ;;  %v542_v50 = vld [vmem:[#allocation10 + $0x1b8] sm:$0xff] }
  0x6a   :  { %591 = vmatpush.msra.mxu2 %v516_v17  ;;  %611 = vmatpush.msra.mxu3 %v517_v19  ;;  %v531_v17 = vld [vmem:[#allocation10 + $0x160] sm:$0xff]  ;;  %v493_v19 = vld [vmem:[#allocation8 + $0x138] sm:$0xff] }
  0x6b   :  { %571 = vmatpush.msra.mxu1 %v550_v59  ;;  %551 = vmatpush.msra.mxu0 %v549_v25  ;;  %v527_v25 = vld [vmem:[#allocation10 + $0x140] sm:$0xff] }
  0x6c   :  { %592 = vmatpush.msra.mxu2 %v514_v20  ;;  %612 = vmatpush.msra.mxu3 %v515_v21  ;;  %v682_v20 = vld [vmem:[#allocation11 + $0x98] sm:$0xff]  ;;  %v529_v21 = vld [vmem:[#allocation10 + $0x150] sm:$0xff] }
  0x6d   :  { %572 = vmatpush.msra.mxu1 %v548_v60  ;;  %552 = vmatpush.msra.mxu0 %v547_v29  ;;  %v336_v60 = vperm.slane %v1227_v49, 1  ;;  %v525_v29 = vld [vmem:[#allocation10 + $0x130] sm:$0xff] }
  0x6e   :  { %593 = vmatpush.msra.mxu2 %v512_v22  ;;  %613 = vmatpush.msra.mxu3 %v513_v24  ;;  %v490_v22 = vld [vmem:[#allocation8 + $0x120] sm:$0xff]  ;;  %v681_v24 = vld [vmem:[#allocation11 + $0x90] sm:$0xff] }
  0x6f   :  { %573 = vmatpush.msra.mxu1 %v546_v62  ;;  %553 = vmatpush.msra.mxu0 %v545_v31  ;;  %v487_v31 = vld [vmem:[#allocation8 + $0x108] sm:$0xff] }
  0x70   :  { %594 = vmatpush.msra.mxu2 %v510_v26  ;;  %614 = vmatpush.msra.mxu3 %v511_v28  ;;  %v488_v26 = vld [vmem:[#allocation8 + $0x110] sm:$0xff]  ;;  %v680_v28 = vld [vmem:[#allocation11 + $0x88] sm:$0xff] }
  0x71   :  { %574 = vmatpush.msra.mxu1 %v544_v63  ;;  %554 = vmatpush.msra.mxu0 %v543_v35  ;;  %v148_v63 = vld [vmem:[#allocation5 + $0x2] sm:$0x3]  ;;  %v521_v35 = vld [vmem:[#allocation10 + $0x110] sm:$0xff] }
  0x72   :  { %595 = vmatpush.msra.mxu2 %v508_v30  ;;  %615 = vmatpush.msra.mxu3 %v509_v33  ;;  %150 = vst [vmem:[#allocation15 + $0x2] sm:$0x3] %v148_v63  ;;  %v486_v30 = vld [vmem:[#allocation8 + $0x100] sm:$0xff]  ;;  %v708_v63 = vld [vmem:[#allocation13 + $0xd8] sm:$0xff] }
  0x73   :  { %575 = vmatpush.msra.mxu1 %v542_v50  ;;  %555 = vmatpush.msra.mxu0 %v541_v39  ;;  %v539_v50 = vld [vmem:[#allocation10 + $0x1a0] sm:$0xff] }
  0x74   :  { %596 = vmatpush.msra.mxu2 %v506_v34  ;;  %616 = vmatpush.msra.mxu3 %v507_v37  ;;  %v523_v34 = vld [vmem:[#allocation10 + $0x120] sm:$0xff] }
  0x75   :  { %576 = vmatpush.msra.mxu1 %v540_v12  ;;  %556 = vmatpush.msra.mxu0 %v539_v50  ;;  %v494_v12 = vld [vmem:[#allocation8 + $0x140] sm:$0xff]  ;;  %v707_v50 = vld [vmem:[#allocation13 + $0xd0] sm:$0xff] }
  0x76   :  { %597 = vmatpush.msra.mxu2 %v504_v38  ;;  %617 = vmatpush.msra.mxu3 %v505_v41  ;;  %v825_v41 = vld [vmem:[%s1272_s8] ss:$0 sm:$0xff] }
  0x77   :  { %577 = vmatpush.msra.mxu1 %v538_v13  ;;  %v495_v13 = vld [vmem:[#allocation8 + $0x148] sm:$0xff] }
  0x78   :  { %598 = vmatpush.msra.mxu2 %v502_v42  ;;  %618 = vmatpush.msra.mxu3 %v503_v44 }
  0x79   :  { %578 = vmatpush.msra.mxu1 %v536_v16  ;;  %v1234_v16 = vld [vmem:[#allocation15 + $0x2] sm:$0x3] }
  0x7a   :  { %481 = vmatmul.f32.vlgmr.msrb.gmra.mxu3 %v1234_v16 }
  0x7b   :  { %579 = vmatpush.msra.mxu1 %v534_v18  ;;  %v492_v18 = vld [vmem:[#allocation8 + $0x130] sm:$0xff] }
  0x7d   :  { %580 = vmatpush.msra.mxu1 %v532_v23  ;;  %v491_v23 = vld [vmem:[#allocation8 + $0x128] sm:$0xff] }
  0x7f   :  { %581 = vmatpush.msra.mxu1 %v530_v27  ;;  %v489_v27 = vld [vmem:[#allocation8 + $0x118] sm:$0xff] }
  0x81   :  { %582 = vmatpush.msra.mxu1 %v528_v32  ;;  %v679_v32 = vld [vmem:[#allocation11 + $0x80] sm:$0xff] }
  0x83   :  { %583 = vmatpush.msra.mxu1 %v526_v36  ;;  %v519_v36 = vld [vmem:[#allocation10 + $0x100] sm:$0xff] }
  0x85   :  { %584 = vmatpush.msra.mxu1 %v524_v40 }
  0x87   :  { %585 = vmatpush.msra.mxu1 %v522_v43 }
  0x89   :  { %586 = vmatpush.msra.mxu1 %v520_v45 }
  0xbf   :  { %v270_v51 = vpop.f32.mrf.mxu1 }
  0xc4   :  { %v310_v55 = vpop.f32.mrf.mxu3 }
  0xc5   :  { %v311_v56 = vadd.f32 %v310_v55, %v270_v51  ;;  %v186_v9 = vpop.f32.mrf.mxu0  ;;  %v691_v51 = vld [vmem:[#allocation11 + $0xe0] sm:$0xff]  ;;  %v688_v55 = vld [vmem:[#allocation11 + $0xc8] sm:$0xff] }
  0xc7   :  { %v339_v58 = vadd.f32 %v335_v53, %v311_v56  ;;  %v690_v53 = vld [vmem:[#allocation11 + $0xd8] sm:$0xff]  ;;  %v687_v56 = vld [vmem:[#allocation11 + $0xc0] sm:$0xff] }
  0xc9   :  { %v804_v61 = vmul.f32 -1.442695, %v339_v58 }
  0xcb   :  { %827 = vpow2.f32 %v804_v61 }
  0xcc   :  { %v290_v57 = vpop.f32.mrf.mxu2 }
  0xd1   :  { %v828_v0 = vpop.eup %827 }
  0xd2   :  { %v347_v1 = vadd.f32 1.0, %v828_v0  ;;  %v500_v0 = vld [vmem:[#allocation8 + $0x170] sm:$0xff] }
  0xd3   :  { %599 = vmatpush.msra.mxu2 %v500_v0  ;;  %v706_v0 = vld [vmem:[#allocation13 + $0xc8] sm:$0xff] }
  0xd4   :  { %829 = vrcp.f32 %v347_v1  ;;  %v360_v5 = vand.u32 2147483648, %v347_v1  ;;  %v358_v7 = vand.u32 2147483647, %v347_v1  ;;  %vm354_vm1 = vweird.f32 %v347_v1 }
  0xd6   :  { %v361_v10 = vor.u32 1.1754944e-38, %v360_v5  ;;  %vm359_vm3 = vcmp.eq.f32.partialorder %v358_v7, 8.507059e+37  ;;  %v499_v5 = vld [vmem:[#allocation8 + $0x168] sm:$0xff]  ;;  %v535_v7 = vld [vmem:[#allocation10 + $0x180] sm:$0xff] }
  0xda   :  { %v830_v2 = vpop.eup %829 }
  0xdb   :  { %v350_v3 = vmul.f32 %v830_v2, %v347_v1  ;;  %vm355_vm0 = vweird.f32 %v830_v2  ;;  %v501_v1 = vld [vmem:[#allocation8 + $0x178] sm:$0xff] }
  0xdc   :  { %vm356_vm2 = vmor %vm354_vm1, %vm355_vm0  ;;  %619 = vmatpush.msra.mxu3 %v501_v1  ;;  %v704_v1 = vld [vmem:[#allocation13 + $0xb8] sm:$0xff] }
  0xdd   :  { %v351_v4 = vsub.f32 1.0, %v350_v3  ;;  %v537_v3 = vld [vmem:[#allocation10 + $0x190] sm:$0xff] }
  0xde   :  { %557 = vmatpush.msra.mxu0 %v537_v3  ;;  %620 = vmatpush.msra.mxu3 %v499_v5  ;;  %v702_v3 = vld [vmem:[#allocation13 + $0xa8] sm:$0xff]  ;;  %v700_v5 = vld [vmem:[#allocation13 + $0x98] sm:$0xff] }
  0xdf   :  { %v352_v6 = vmul.f32 %v830_v2, %v351_v4  ;;  %v498_v4 = vld [vmem:[#allocation8 + $0x160] sm:$0xff] }
  0xe0   :  { %600 = vmatpush.msra.mxu2 %v498_v4  ;;  %558 = vmatpush.msra.mxu0 %v535_v7  ;;  %v701_v4 = vld [vmem:[#allocation13 + $0xa0] sm:$0xff] }
  0xe1   :  { %v353_v8 = vadd.f32 %v830_v2, %v352_v6  ;;  %v685_v6 = vld [vmem:[#allocation11 + $0xb0] sm:$0xff] }
  0xe3   :  { %v357_v11 = vsel %vm356_vm2, %v830_v2, %v353_v8  ;;  %v686_v2 = vld [vmem:[#allocation11 + $0xb8] sm:$0xff]  ;;  %v496_v8 = vld [vmem:[#allocation8 + $0x150] sm:$0xff] }
  0xe4   :  { %v362_v14 = vsel %vm359_vm3, %v361_v10, %v357_v11  ;;  %601 = vmatpush.msra.mxu2 %v496_v8  ;;  %v684_v10 = vld [vmem:[#allocation11 + $0xa8] sm:$0xff]  ;;  %v533_v11 = vld [vmem:[#allocation10 + $0x170] sm:$0xff] }
  0xe5   :  { %v395_v15 = vmul.f32 %v362_v14, %v186_v9  ;;  %v330_v58 = vpop.f32.mrf.mxu0  ;;  %v497_v9 = vld [vmem:[#allocation8 + $0x158] sm:$0xff]  ;;  %v683_v14 = vld [vmem:[#allocation11 + $0xa0] sm:$0xff]  ;;  %559 = vmatpush.msra.mxu0 %v533_v11  ;;  %v698_v8 = vld [vmem:[#allocation13 + $0x88] sm:$0xff] }
  0xe6   :  { %v331_v59 = vadd.f32 %v330_v58, %v290_v57  ;;  %621 = vmatpush.msra.mxu3 %v497_v9  ;;  %602 = vmatpush.msra.mxu2 %v494_v12  ;;  %v697_v11 = vld [vmem:[#allocation13 + $0x80] sm:$0xff] }
  0xe7   :  { %428 = vmatmul.f32.vlgmr.msrb.gmra.mxu1 %v395_v15  ;;  %560 = vmatpush.msra.mxu0 %v531_v17 }
  0xe8   :  { %733 = vmatpush.msrb.mxu1 %v694_v46  ;;  %v340_v61 = vadd.f32 %v336_v60, %v331_v59  ;;  %622 = vmatpush.msra.mxu3 %v495_v13  ;;  %v712_v59 = vld [vmem:[#allocation13 + $0xf8] sm:$0xff]  ;;  %v711_v60 = vld [vmem:[#allocation13 + $0xf0] sm:$0xff] }
  0xe9   :  { %603 = vmatpush.msra.mxu2 %v492_v18  ;;  %561 = vmatpush.msra.mxu0 %v529_v21 }
  0xea   :  { %734 = vmatpush.msrb.mxu1 %v693_v47  ;;  %v805_v62 = vmul.f32 -1.442695, %v340_v61  ;;  %623 = vmatpush.msra.mxu3 %v493_v19  ;;  %v710_v61 = vld [vmem:[#allocation13 + $0xe8] sm:$0xff] }
  0xeb   :  { %604 = vmatpush.msra.mxu2 %v490_v22  ;;  %562 = vmatpush.msra.mxu0 %v527_v25 }
  0xec   :  { %735 = vmatpush.msrb.mxu1 %v692_v48  ;;  %831 = vpow2.f32 %v805_v62  ;;  %624 = vmatpush.msra.mxu3 %v491_v23  ;;  %v449_v40 = vpop.f32.mrf.mxu2  ;;  %v709_v62 = vld [vmem:[#allocation13 + $0xe0] sm:$0xff] }
  0xed   :  { %605 = vmatpush.msra.mxu2 %v488_v26  ;;  %563 = vmatpush.msra.mxu0 %v525_v29 }
  0xee   :  { %736 = vmatpush.msrb.mxu1 %v691_v51  ;;  %625 = vmatpush.msra.mxu3 %v489_v27 }
  0xef   :  { %587 = vmatmul.f32.vlgmr.msra.gmra.mxu1 %v1234_v16  ;;  %606 = vmatpush.msra.mxu2 %v486_v30 }
  0xf0   :  { %737 = vmatpush.msrb.mxu1 %v690_v53  ;;  %626 = vmatpush.msra.mxu3 %v487_v31 }
  0xf1   :  { %564 = vmatpush.msra.mxu0 %v523_v34 }
  0xf2   :  { %738 = vmatpush.msrb.mxu1 %v689_v54  ;;  %v832_v49 = vpop.eup %831 }
  0xf3   :  { %v1232_v15 = vadd.f32 1.0, %v832_v49  ;;  %565 = vmatpush.msra.mxu0 %v521_v35  ;;  %v699_v49 = vld [vmem:[#allocation13 + $0x90] sm:$0xff] }
  0xf4   :  { %739 = vmatpush.msrb.mxu1 %v688_v55 }
  0xf5   :  { %833 = vrcp.f32 %v1232_v15  ;;  %566 = vmatpush.msra.mxu0 %v519_v36  ;;  %vm369_vm4 = vweird.f32 %v1232_v15  ;;  %v375_v42 = vand.u32 2147483648, %v1232_v15  ;;  %v373_v45 = vand.u32 2147483647, %v1232_v15 }
  0xf6   :  { %740 = vmatpush.msrb.mxu1 %v687_v56  ;;  %567 = vmatmul.f32.vlgmr.msra.gmra.mxu0 %v1234_v16 }
  0xf7   :  { %v376_v48 = vor.u32 1.1754944e-38, %v375_v42  ;;  %vm374_vm7 = vcmp.eq.f32.partialorder %v373_v45, 8.507059e+37  ;;  %713 = vmatpush.msrb.mxu0 %v712_v59  ;;  %v826_v42 = vld [vmem:[%s1272_s8 + $0x1] ss:$0 sm:$0xff] }
  0xf8   :  { %741 = vmatpush.msrb.mxu1 %v686_v2  ;;  %v703_v2 = vld [vmem:[#allocation13 + $0xb0] sm:$0xff] }
  0xf9   :  { %714 = vmatpush.msrb.mxu0 %v711_v60 }
  0xfa   :  { %742 = vmatpush.msrb.mxu1 %v685_v6  ;;  %v806_v6 = vld [vmem:[%s1269_s5 + $0x2] sm:$0x3] }
  0xfb   :  { %v834_v33 = vpop.eup %833  ;;  %715 = vmatpush.msrb.mxu0 %v710_v61  ;;  %v634_v9 = vperm.slane %v806_v6, 0 }
  0xfc   :  { %743 = vmatpush.msrb.mxu1 %v684_v10  ;;  %v365_v37 = vmul.f32 %v834_v33, %v1232_v15  ;;  %vm370_vm5 = vweird.f32 %v834_v33 }
  0xfd   :  { %vm371_vm6 = vmor %vm369_vm4, %vm370_vm5  ;;  %716 = vmatpush.msrb.mxu0 %v709_v62  ;;  %v482_v27 = vpop.f32.mrf.mxu3 }
  0xfe   :  { %744 = vmatpush.msrb.mxu1 %v683_v14  ;;  %v366_v38 = vsub.f32 1.0, %v365_v37 }
  0xff   :  { %717 = vmatpush.msrb.mxu0 %v708_v63 }
 0x100   :  { %745 = vmatpush.msrb.mxu1 %v682_v20  ;;  %v367_v39 = vmul.f32 %v834_v33, %v366_v38 }
 0x101   :  { %718 = vmatpush.msrb.mxu0 %v707_v50 }
 0x102   :  { %746 = vmatpush.msrb.mxu1 %v681_v24  ;;  %v368_v44 = vadd.f32 %v834_v33, %v367_v39 }
 0x103   :  { %719 = vmatpush.msrb.mxu0 %v706_v0 }
 0x104   :  { %747 = vmatpush.msrb.mxu1 %v680_v28  ;;  %v372_v51 = vsel %vm371_vm6, %v834_v33, %v368_v44  ;;  %v635_v33 = vperm.slane %v806_v6, 1 }
 0x105   :  { %v377_v53 = vsel %vm374_vm7, %v376_v48, %v372_v51 }
 0x106   :  { %748 = vmatpush.msrb.mxu1 %v679_v32  ;;  %v459_v54 = vsub.f32 1.0, %v377_v53  ;;  %v458_v56 = vmul.f32 %v377_v53, %v1206_v52  ;;  %v705_v52 = vld [vmem:[#allocation13 + $0xc0] sm:$0xff] }
 0x107   :  { %720 = vmatpush.msrb.mxu0 %v705_v52 }
 0x109   :  { %721 = vmatpush.msrb.mxu0 %v704_v1 }
 0x10b   :  { %722 = vmatpush.msrb.mxu0 %v703_v2 }
 0x10d   :  { %723 = vmatpush.msrb.mxu0 %v702_v3 }
 0x10f   :  { %724 = vmatpush.msrb.mxu0 %v701_v4 }
 0x111   :  { %725 = vmatpush.msrb.mxu0 %v700_v5 }
 0x113   :  { %726 = vmatpush.msrb.mxu0 %v699_v49 }
 0x115   :  { %727 = vmatpush.msrb.mxu0 %v698_v8 }
 0x117   :  { %728 = vmatpush.msrb.mxu0 %v697_v11 }
 0x164   :  { %v429_v43 = vpop.f32.mrf.mxu1 }
 0x165   :  { %v450_v46 = vadd.f32 %v449_v40, %v429_v43 }
 0x167   :  { %v456_v47 = vadd.f32 %v825_v41, %v450_v46 }
 0x169   :  { %835 = vtanh.f32 %v456_v47 }
 0x16c   :  { %v588_v31 = vpop.f32.mrf.mxu1 }
 0x16f   :  { %v836_v55 = vpop.eup %835 }
 0x170   :  { %v460_v57 = vmul.f32 %v836_v55, %v459_v54 }
 0x172   :  { %v461_v58 = vadd.f32 %v460_v57, %v458_v56 }
 0x173   :  { %v568_v7 = vpop.f32.mrf.mxu0 }
 0x174   :  { %607 = vmatmul.f32.vlgmr.msra.gmra.mxu2 %v461_v58  ;;  %462 = vst [vmem:[#allocation15] sm:$0x3] %v461_v58  ;;  %627 = vmatmul.f32.vlgmr.msra.gmra.mxu3 %v461_v58 }
 0x175   :  { %749 = vmatmul.f32.vlgmr.msrb.gmra.mxu1 %v461_v58 }
 0x1f2   :  { %v750_v43 = vpop.f32.mrf.mxu1 }
 0x1f7   :  { %v608_v10 = vpop.f32.mrf.mxu2  ;;  %v628_v30 = vpop.f32.mrf.mxu3 }
 0x1f8   :  { %v609_v12 = vadd.f32 %v608_v10, %v568_v7  ;;  %v629_v32 = vadd.f32 %v628_v30, %v588_v31 }
 0x1fa   :  { %v638_v13 = vadd.f32 %v634_v9, %v609_v12  ;;  %v639_v34 = vadd.f32 %v635_v33, %v629_v32 }
 0x1fc   :  { %v807_v14 = vmul.f32 -1.442695, %v638_v13  ;;  %v808_v35 = vmul.f32 -1.442695, %v639_v34 }
 0x1fe   :  { %837 = vpow2.f32 %v807_v14 }
 0x204   :  { %v838_v15 = vpop.eup %837 }
 0x205   :  { %v646_v17 = vadd.f32 1.0, %v838_v15 }
 0x207   :  { %839 = vrcp.f32 %v646_v17  ;;  %v659_v21 = vand.u32 2147483648, %v646_v17  ;;  %v657_v23 = vand.u32 2147483647, %v646_v17  ;;  %vm653_vm9 = vweird.f32 %v646_v17 }
 0x208   :  { %841 = vpow2.f32 %v808_v35 }
 0x209   :  { %v660_v25 = vor.u32 1.1754944e-38, %v659_v21  ;;  %vm658_vm11 = vcmp.eq.f32.partialorder %v657_v23, 8.507059e+37 }
 0x20d   :  { %v840_v18 = vpop.eup %839 }
 0x20e   :  { %v649_v19 = vmul.f32 %v840_v18, %v646_v17  ;;  %vm654_vm8 = vweird.f32 %v840_v18  ;;  %v842_v36 = vpop.eup %841 }
 0x20f   :  { %vm655_vm10 = vmor %vm653_vm9, %vm654_vm8  ;;  %v647_v37 = vadd.f32 1.0, %v842_v36 }
 0x210   :  { %v650_v20 = vsub.f32 1.0, %v649_v19 }
 0x211   :  { %843 = vrcp.f32 %v647_v37  ;;  %v674_v47 = vand.u32 2147483648, %v647_v37  ;;  %vm668_vm13 = vweird.f32 %v647_v37  ;;  %v672_v48 = vand.u32 2147483647, %v647_v37 }
 0x212   :  { %v651_v22 = vmul.f32 %v840_v18, %v650_v20 }
 0x213   :  { %v675_v54 = vor.u32 1.1754944e-38, %v674_v47  ;;  %vm673_vm15 = vcmp.eq.f32.partialorder %v672_v48, 8.507059e+37 }
 0x214   :  { %v652_v24 = vadd.f32 %v840_v18, %v651_v22 }
 0x216   :  { %v656_v26 = vsel %vm655_vm10, %v840_v18, %v652_v24 }
 0x217   :  { %v661_v28 = vsel %vm658_vm11, %v660_v25, %v656_v26  ;;  %v844_v38 = vpop.eup %843 }
 0x218   :  { %v695_v29 = vmul.f32 %v661_v28, %v482_v27  ;;  %v664_v39 = vmul.f32 %v844_v38, %v647_v37  ;;  %vm669_vm12 = vweird.f32 %v844_v38 }
 0x219   :  { %vm670_vm14 = vmor %vm668_vm13, %vm669_vm12 }
 0x21a   :  { %729 = vmatmul.f32.vlgmr.msrb.gmra.mxu0 %v695_v29  ;;  %v665_v40 = vsub.f32 1.0, %v664_v39 }
 0x21c   :  { %v666_v41 = vmul.f32 %v844_v38, %v665_v40 }
 0x21e   :  { %v667_v45 = vadd.f32 %v844_v38, %v666_v41 }
 0x220   :  { %v671_v53 = vsel %vm670_vm14, %v844_v38, %v667_v45 }
 0x221   :  { %v676_v55 = vsel %vm673_vm15, %v675_v54, %v671_v53 }
 0x222   :  { %v761_v56 = vsub.f32 1.0, %v676_v55  ;;  %v760_v58 = vmul.f32 %v676_v55, %v1234_v16 }
 0x297   :  { %v730_v44 = vpop.f32.mrf.mxu0 }
 0x298   :  { %v751_v46 = vadd.f32 %v750_v43, %v730_v44 }
 0x29a   :  { %v758_v51 = vadd.f32 %v826_v42, %v751_v46 }
 0x29c   :  { %845 = vtanh.f32 %v758_v51 }
 0x2a2   :  { %v846_v57 = vpop.eup %845 }
 0x2a3   :  { %v762_v59 = vmul.f32 %v846_v57, %v761_v56 }
 0x2a5   :  { %v763_v60 = vadd.f32 %v762_v59, %v760_v58 }
 0x2a7   :  { %765 = vst [vmem:[#allocation14] sm:$0x3] %v763_v60 }
 0x2a8   :  { %776 = dma.vmem_to_hbm [thread:$0]  %s772_s15, 32, %s774_s17, [#allocation4]   ;;  %764 = vst [vmem:[#allocation15 + $0x2] sm:$0x3] %v763_v60 }
 0x2a9   :  { %789 = dma.vmem_to_hbm [thread:$0]  %s782_s19, 64, %s784_s23, [#allocation16], %s1076_s21, %s1076_s21, %s1077_s22  }
 0x2aa   :  { %1071 = dma.done.wait [#allocation4], 32  }
 0x2ab   :  { %1072 = vsyncadd [#allocation4], 4294967264 }
 0x2ac   :  { %1073 = dma.done.wait [#allocation16], 64  }
 0x2ad   :  { %1074 = vsyncadd [#allocation16], 4294967232 }
 0x2ae   :  { %798 = vsyncpa [#allocation3], 1 }
 0x2af   :  { %799 = vsyncpa [#allocation6], 1 }
 0x2b0   :  { %800 = vsyncpa [#allocation9], 1 }
 0x2b1   :  { %801 = vsyncpa [#allocation12], 1 }
 0x2b2   :  { %802 = vsyncpa [#allocation4], 1 }
 0x2b3   :  { %803 = vsyncpa [#allocation16], 1 }

</bundles_post_ra>
